<compile_context>
chip_gen: v5e
topology: v5e:2x2
jax: 0.10.0
libtpu: 0.0.40
codegen_flags: <defaults>
</compile_context>

<pallas_src>
import jax
import jax.numpy as jnp
from jax import lax
from jax.experimental import pallas as pl
from jax.experimental.pallas import tpu as pltpu


def _round_up(v, m):
    return ((v + m - 1) // m) * m


def _num_tensorcores():
    """TensorCores per device (2 on v7x-class parts, else 1). Safe fallback = 1."""
    try:
        dev = jax.devices()[0]
        for attr in ("num_cores", "core_count", "num_tensorcores"):
            v = getattr(dev, attr, None)
            if isinstance(v, int) and v >= 1:
                return v
    except Exception:
        pass
    return 1


def _choose_row_tile(n_rows, tm, num_cores):
    """Row (lane-axis) tile.

    Single-TC (v5e/v6e): one tile covering the whole problem when it fits — the
    grid is a sequential loop, so extra steps are pure overhead.
    Multi-TC (v7x): keep >= num_cores grid steps so dimension_semantics=("parallel",)
    actually shards the row axis across TensorCores.
    """
    if n_rows <= 128 or (num_cores <= 1 and n_rows <= tm):
        return n_rows
    tm_eff = max(128, (min(tm, _round_up(n_rows, 128)) // 128) * 128)
    if num_cores >= 2:
        per_core = _round_up(pl.cdiv(n_rows, num_cores), 128)
        tm_eff = min(tm_eff, per_core)
    return tm_eff


def _pack_params(f_params, skip_params, neuron_dim, param_dtype):
    """Transpose, fuse (skip || forward) per layer, pack everything into one array.

    Returns (packed, layer_meta, bias_col) where layer_meta[i] = (row_offset,
    skip_rows): skip_rows == d_last when the skip is fused into the matmul block
    (real Linear skip, or an identity matrix materialized for layer 0), 0 when the
    skip is a plain in-kernel add (identity skip on layers >= 1).
    """
    L = len(neuron_dim) - 1
    d_last = neuron_dim[-1]
    max_din = max(neuron_dim[:-1])

    def skip_block(i):
        sp = skip_params[i]
        if sp is not None:
            s_w, s_b = sp                                  # (d_i, d_last), (1, d_last)
            return s_w.T, s_b.reshape(-1, 1)
        if i == 0:
            # Identity skip on the (row-major) input layer: fold eye() into the
            # fused matmul so the x tile never needs an in-kernel transpose.
            return (jnp.eye(d_last, neuron_dim[0], dtype=jnp.float32),
                    jnp.zeros((d_last, 1), jnp.float32))
        return None, None                                  # exact add in-kernel

    placed, layer_meta, off = [], [], 0
    for i in range(L - 1):
        f_w, f_b = f_params[i]                             # (d_i, d_{i+1}), (1, d_{i+1})
        f_wt, f_bt = f_w.T, f_b.reshape(-1, 1)
        s_wt, s_bt = skip_block(i)
        if s_wt is None:
            wt, bt, skip_rows = f_wt, f_bt, 0
        else:
            wt = jnp.concatenate([s_wt, f_wt], axis=0)
            bt = jnp.concatenate([s_bt, f_bt], axis=0)
            skip_rows = d_last
        placed.append((off, wt, bt))
        layer_meta.append((off, skip_rows))
        off += _round_up(wt.shape[0], 8)                   # keep blocks sublane-aligned

    s_wt, s_bt = skip_block(L - 1)
    if s_wt is None:
        layer_meta.append((off, 0))
    else:
        placed.append((off, s_wt, s_bt))
        layer_meta.append((off, d_last))
        off += _round_up(d_last, 8)

    total_rows = _round_up(max(off, 8), 8)
    bias_col = max_din
    cols = _round_up(max_din + 1, 128)                     # lane-aligned width (tiny)
    packed = jnp.zeros((total_rows, cols), jnp.float32)
    for o, wt, bt in placed:
        r, din = wt.shape
        packed = packed.at[o:o + r, :din].set(wt.astype(jnp.float32))
        packed = packed.at[o:o + r, bias_col:bias_col + 1].set(bt.astype(jnp.float32))
    return packed.astype(param_dtype), tuple(layer_meta), bias_col


def _make_kernel(neuron_dim, layer_meta, bias_col, precision):
    """Fused SkipMLP kernel body for a fixed layer structure."""
    L = len(neuron_dim) - 1
    d_last = neuron_dim[-1]

    def kernel(x_ref, p_ref, out_ref):
        # x_ref:   (tm, d0)     natural row-major input tile (no wrapper transpose)
        # p_ref:   (rows, cols) packed fused weights; bias in column `bias_col`
        # out_ref: (d_last, tm) lane-dense output tile (unmasked full-lane stores)
        xi = x_ref[...]
        tm = xi.shape[0]
        out = jnp.zeros((d_last, tm), jnp.float32)
        row_major = True          # xi is (tm, d) before the first matmul, (d, tm) after

        def fused_matmul(layer, act, act_row_major):
            off, skip_rows = layer_meta[layer]
            d_in = neuron_dim[layer]
            d_out = neuron_dim[layer + 1] if layer < L - 1 else 0
            rows = skip_rows + d_out
            w = p_ref[off:off + rows, 0:d_in]
            b = p_ref[off:off + rows, bias_col:bias_col + 1].astype(jnp.float32)
            a = act.astype(w.dtype)   # bf16 params -> bf16 MXU inputs, f32 accumulation
            if act_row_major:
                # act is (tm, d_in): contract on its feature axis; the MXU takes the
                # transposed operand natively (same pattern as q @ k^T in attention).
                z = lax.dot_general(w, a, (((1,), (1,)), ((), ())),
                                    preferred_element_type=jnp.float32,
                                    precision=precision)
            else:
                z = jnp.dot(w, a, preferred_element_type=jnp.float32,
                            precision=precision)
            return z + b              # (rows, 1) bias broadcast: cheap VPU add

        for layer in range(L - 1):
            _, skip_rows = layer_meta[layer]
            z = fused_matmul(layer, xi, row_major)          # one MXU pass: skip || fwd
            if skip_rows:
                out = out + z[:d_last, :]
                h = z[d_last:, :]
            else:                                           # identity skip, layer >= 1
                out = out + xi
                h = z
            # SiLU with a single EUP op: silu(h) = h * (0.5*tanh(0.5*h) + 0.5).
            xi = h * (0.5 * jnp.tanh(0.5 * h) + 0.5)
            row_major = False

        _, skip_rows = layer_meta[L - 1]
        if skip_rows:
            out = out + fused_matmul(L - 1, xi, row_major)
        else:
            out = out + xi

        out_ref[...] = out.astype(out_ref.dtype)

    return kernel


def skip_mlp_pallas(x, f_params, skip_params, neuron_dim, *, tm=512,
                    num_cores=None, transpose_output=True,
                    param_dtype=jnp.float32, precision=None):
    """Fused SkipMLP forward.

    x:            [N, neuron_dim[0]]
    f_params:     list of (W, b), W: (d_i, d_{i+1}), b: (1, d_{i+1})              (len L-1)
    skip_params:  list of (W, b) or None (identity), W: (d_i, d_last), b: (1, d_last) (len L)
    tm:           row tile on the lane axis; sweep {512, 1024, 2048} for large N.
    transpose_output: True -> [N, d_last] (PyTorch layout); False -> (d_last, N)
                  lane-major slab, skipping the extra XLA transpose pass.
    param_dtype:  jnp.bfloat16 halves weight HBM traffic on v6e/v7x (f32 accumulation
                  is kept); default f32 for exact parity with the reference.
    precision:    pass lax.Precision.HIGHEST for strict f32 matmul parity.
    """
    L = len(neuron_dim) - 1
    d_last = neuron_dim[-1]
    N, d0 = x.shape
    assert d0 == neuron_dim[0]

    packed, layer_meta, bias_col = _pack_params(f_params, skip_params, neuron_dim,
                                                param_dtype)
    kernel = _make_kernel(tuple(neuron_dim), layer_meta, bias_col, precision)

    if num_cores is None:
        num_cores = _num_tensorcores()
    tm_eff = _choose_row_tile(N, tm, num_cores)
    grid = (pl.cdiv(N, tm_eff),)     # partial last block handled by Pallas masking

    out_t = pl.pallas_call(
        kernel,
        out_shape=jax.ShapeDtypeStruct((d_last, N), x.dtype),
        grid_spec=pltpu.PrefetchScalarGridSpec(
            num_scalar_prefetch=0,
            grid=grid,
            in_specs=[
                # x in its natural [N, d0] layout — contiguous HBM slab per tile.
                pl.BlockSpec((tm_eff, d0), lambda i: (i, 0)),
                # Packed params: constant block index -> Pallas fetches it once,
                # no per-step re-DMA (no extra buffering needed).
                pl.BlockSpec(packed.shape, lambda i: (0, 0)),
            ],
            out_specs=pl.BlockSpec((d_last, tm_eff), lambda i: (0, i)),
        ),
        compiler_params=pltpu.CompilerParams(
            dimension_semantics=("parallel",)),
    )(x, packed)

    if transpose_output:
        return out_t.T               # [N, d_last] exactly like the PyTorch forward
    return out_t                     # (d_last, N) if the consumer accepts lane-major


def skip_mlp_reference(x, f_params, skip_params, neuron_dim):
    """Pure-JAX reference mirroring the PyTorch forward."""
    L = len(neuron_dim) - 1
    out = 0.0
    xi = x
    for layer in range(L - 1):
        sp = skip_params[layer]
        out = out + (xi if sp is None else xi @ sp[0] + sp[1])
        w, b = f_params[layer]
        h = xi @ w + b
        xi = h * jax.nn.sigmoid(h)
    sp = skip_params[-1]
    out = out + (xi if sp is None else xi @ sp[0] + sp[1])
    return out


def init_params(key, neuron_dim):
    """Deterministic parameter init (weights as (in, out), biases as (1, out))."""
    L = len(neuron_dim) - 1
    d_last = neuron_dim[-1]
    f_params, skip_params = [], []
    for i in range(L):
        if i != L - 1:
            key, kw, kb = jax.random.split(key, 3)
            scale = 1.0 / jnp.sqrt(neuron_dim[i])
            w = jax.random.uniform(kw, (neuron_dim[i], neuron_dim[i + 1]),
                                   jnp.float32, -scale, scale)
            b = jax.random.uniform(kb, (1, neuron_dim[i + 1]),
                                   jnp.float32, -scale, scale)
            f_params.append((w, b))
        if neuron_dim[i] == d_last:
            skip_params.append(None)  # IdentityNN
        else:
            key, kw, kb = jax.random.split(key, 3)
            scale = 1.0 / jnp.sqrt(neuron_dim[i])
            w = jax.random.uniform(kw, (neuron_dim[i], d_last),
                                   jnp.float32, -scale, scale)
            b = jax.random.uniform(kb, (1, d_last),
                                   jnp.float32, -scale, scale)
            skip_params.append((w, b))
    return f_params, skip_params


if __name__ == "__main__":
    # neuron_dim includes one hidden dim equal to the output dim so both the
    # fused-Linear skip branch and the exact-identity skip branch are exercised.
    neuron_dim = [16, 8, 32, 8]
    N = 256  # rows (e.g. flattened batch of feature vectors)

    key = jax.random.PRNGKey(0)
    key, kx = jax.random.split(key)
    x = jax.random.normal(kx, (N, neuron_dim[0]), jnp.float32)

    f_params, skip_params = init_params(key, neuron_dim)

    out = skip_mlp_pallas(x, f_params, skip_params, neuron_dim)
    out = jax.block_until_ready(out)

    ref = skip_mlp_reference(x, f_params, skip_params, neuron_dim)
    assert out.shape == (N, neuron_dim[-1])
    assert jnp.allclose(out, ref, atol=2e-5, rtol=2e-5), (
        "mismatch vs JAX reference, max abs diff = "
        f"{float(jnp.max(jnp.abs(out - ref)))}")

    print("KERNEL_OK")
</pallas_src>

<mosaic_0001>
module attributes {stable_mosaic.version = 11 : i64} {
  func.func @kernel(%arg0: i32, %arg1: memref<256x16xf32, #tpu.memory_space<vmem>>, %arg2: memref<56x128xf32, #tpu.memory_space<vmem>>, %arg3: memref<8x256xf32, #tpu.memory_space<vmem>>) attributes {dimension_semantics = [#tpu.dimension_semantics<parallel>], iteration_bounds = array<i64: 1>, scalar_prefetch = 0 : i64, scratch_operands = 0 : i64, tpu.core_type = #tpu.core_type<tc>, window_params = [{transform_indices = @transform_0, window_bounds = array<i64: 256, 16>}, {pipeline_mode = #tpu.pipeline_mode<synchronous>, transform_indices = @transform_1, window_bounds = array<i64: 56, 128>}, {transform_indices = @transform_2, window_bounds = array<i64: 8, 256>}]} {
    %c0 = arith.constant 0 : index
    %c0_0 = arith.constant 0 : index
    %0 = vector.load %arg1[%c0, %c0_0] : memref<256x16xf32, #tpu.memory_space<vmem>>, vector<256x16xf32>
    %cst = arith.constant 0.000000e+00 : f32
    %1 = vector.broadcast %cst : f32 to vector<8x256xf32>
    %c0_1 = arith.constant 0 : index
    %c0_2 = arith.constant 0 : index
    %2 = vector.load %arg2[%c0_1, %c0_2] : memref<56x128xf32, #tpu.memory_space<vmem>>, vector<16x16xf32>
    %c0_3 = arith.constant 0 : index
    %c32 = arith.constant 32 : index
    %3 = vector.load %arg2[%c0_3, %c32] : memref<56x128xf32, #tpu.memory_space<vmem>>, vector<16x1xf32>
    %cst_4 = arith.constant dense<0.000000e+00> : vector<16x256xf32>
    %4 = tpu.matmul %2, %0, %cst_4 {dimension_numbers = #tpu.dot_dimension_numbers<[1], [1], [0], [0], [0, 0, 1, 0], [], []>} : vector<16x16xf32>, vector<256x16xf32>, vector<16x256xf32> -> vector<16x256xf32>
    %5 = vector.broadcast %3 : vector<16x1xf32> to vector<16x256xf32>
    %6 = arith.addf %4, %5 : vector<16x256xf32>
    %7 = vector.extract_strided_slice %6 {offsets = [0, 0], sizes = [8, 256], strides = [1, 1]} : vector<16x256xf32> to vector<8x256xf32>
    %8 = arith.addf %1, %7 : vector<8x256xf32>
    %9 = vector.extract_strided_slice %6 {offsets = [8, 0], sizes = [8, 256], strides = [1, 1]} : vector<16x256xf32> to vector<8x256xf32>
    %cst_5 = arith.constant 5.000000e-01 : f32
    %10 = vector.broadcast %cst_5 : f32 to vector<8x256xf32>
    %11 = arith.mulf %10, %9 : vector<8x256xf32>
    %12 = math.tanh %11 : vector<8x256xf32>
    %cst_6 = arith.constant 5.000000e-01 : f32
    %13 = vector.broadcast %cst_6 : f32 to vector<8x256xf32>
    %14 = arith.mulf %13, %12 : vector<8x256xf32>
    %cst_7 = arith.constant 5.000000e-01 : f32
    %15 = vector.broadcast %cst_7 : f32 to vector<8x256xf32>
    %16 = arith.addf %14, %15 : vector<8x256xf32>
    %17 = arith.mulf %9, %16 : vector<8x256xf32>
    %c16 = arith.constant 16 : index
    %c0_8 = arith.constant 0 : index
    %18 = vector.load %arg2[%c16, %c0_8] : memref<56x128xf32, #tpu.memory_space<vmem>>, vector<32x8xf32>
    %c16_9 = arith.constant 16 : index
    %c32_10 = arith.constant 32 : index
    %19 = vector.load %arg2[%c16_9, %c32_10] : memref<56x128xf32, #tpu.memory_space<vmem>>, vector<32x1xf32>
    %cst_11 = arith.constant dense<0.000000e+00> : vector<32x256xf32>
    %20 = tpu.matmul %18, %17, %cst_11 {dimension_numbers = #tpu.dot_dimension_numbers<[1], [0], [0], [1], [0, 0, 1, 1], [], []>} : vector<32x8xf32>, vector<8x256xf32>, vector<32x256xf32> -> vector<32x256xf32>
    %21 = vector.broadcast %19 : vector<32x1xf32> to vector<32x256xf32>
    %22 = arith.addf %20, %21 : vector<32x256xf32>
    %23 = arith.addf %8, %17 : vector<8x256xf32>
    %cst_12 = arith.constant 5.000000e-01 : f32
    %24 = vector.broadcast %cst_12 : f32 to vector<32x256xf32>
    %25 = arith.mulf %24, %22 : vector<32x256xf32>
    %26 = math.tanh %25 : vector<32x256xf32>
    %cst_13 = arith.constant 5.000000e-01 : f32
    %27 = vector.broadcast %cst_13 : f32 to vector<32x256xf32>
    %28 = arith.mulf %27, %26 : vector<32x256xf32>
    %cst_14 = arith.constant 5.000000e-01 : f32
    %29 = vector.broadcast %cst_14 : f32 to vector<32x256xf32>
    %30 = arith.addf %28, %29 : vector<32x256xf32>
    %31 = arith.mulf %22, %30 : vector<32x256xf32>
    %c48 = arith.constant 48 : index
    %c0_15 = arith.constant 0 : index
    %32 = vector.load %arg2[%c48, %c0_15] : memref<56x128xf32, #tpu.memory_space<vmem>>, vector<8x32xf32>
    %c48_16 = arith.constant 48 : index
    %c32_17 = arith.constant 32 : index
    %33 = vector.load %arg2[%c48_16, %c32_17] : memref<56x128xf32, #tpu.memory_space<vmem>>, vector<8x1xf32>
    %cst_18 = arith.constant dense<0.000000e+00> : vector<8x256xf32>
    %34 = tpu.matmul %32, %31, %cst_18 {dimension_numbers = #tpu.dot_dimension_numbers<[1], [0], [0], [1], [0, 0, 1, 1], [], []>} : vector<8x32xf32>, vector<32x256xf32>, vector<8x256xf32> -> vector<8x256xf32>
    %35 = vector.broadcast %33 : vector<8x1xf32> to vector<8x256xf32>
    %36 = arith.addf %34, %35 : vector<8x256xf32>
    %37 = arith.addf %23, %36 : vector<8x256xf32>
    %c0_19 = arith.constant 0 : index
    %c0_20 = arith.constant 0 : index
    %38 = vector.load %arg3[%c0_19, %c0_20] : memref<8x256xf32, #tpu.memory_space<vmem>>, vector<8x256xf32>
    tpu.vector_store %arg3[%c0_19, %c0_20], %37 {strides = array<i32>} : memref<8x256xf32, #tpu.memory_space<vmem>>, vector<8x256xf32>,
    return
  }
  func.func @transform_0(%arg0: i32) -> (i32, i32) {
    %c0_i32 = arith.constant 0 : i32
    %c0_i32_0 = arith.constant 0 : i32
    return %arg0, %c0_i32 : i32, i32
  }
  func.func @transform_1(%arg0: i32) -> (i32, i32) {
    %c0_i32 = arith.constant 0 : i32
    %c0_i32_0 = arith.constant 0 : i32
    %c0_i32_1 = arith.constant 0 : i32
    return %c0_i32, %c0_i32_0 : i32, i32
  }
  func.func @transform_2(%arg0: i32) -> (i32, i32) {
    %c0_i32 = arith.constant 0 : i32
    %c0_i32_0 = arith.constant 0 : i32
    return %c0_i32, %arg0 : i32, i32
  }
}

</mosaic_0001>

<bundles_post_ra>
// kernel: tpu_custom_call.1
= control target key start
LH: loop header
LB: loop body
LE: loop exit
PB: predicated region body
PF: predicated region fallthrough
CT: control target
= control target key end

     0   :  { %vm56_vm0 = vcmask 130048   ;;  %s716_s0 = inlined_call_operand.vmem [shape: f32[256,16], index: 0, kind: input, shape index: {}]   ;;  %s717_s1 = inlined_call_operand.vmem [shape: f32[56,128], index: 1, kind: input, shape index: {}]   ;;  %s718_s2 = inlined_call_operand.hbm [shape: f32[8,256], index: 2, kind: output, shape index: {}]  }
   0x1   :  { %v27_v0 = vld [vmem:[%s716_s0 + $0x78] sm:$0xff]  ;;  %v26_v2 = vld [vmem:[%s716_s0 + $0x70] sm:$0xff]  ;;  %v25_v4 = vld [vmem:[%s716_s0 + $0x68] sm:$0xff] }
   0x2   :  { %v43_v1 = vld [vmem:[%s716_s0 + $0xf8] sm:$0xff]  ;;  %417 = vmatpush.xpose.msk.msra.mxu0 %vm56_vm0, %v27_v0  ;;  %v42_v3 = vld [vmem:[%s716_s0 + $0xf0] sm:$0xff]  ;;  %v41_v5 = vld [vmem:[%s716_s0 + $0xe8] sm:$0xff] }
   0x3   :  { %435 = vmatpush.xpose.msk.msra.mxu1 %vm56_vm0, %v43_v1 }
   0x6   :  { %418 = vmatpush.xpose.msk.msra.mxu0 %vm56_vm0, %v26_v2 }
   0x7   :  { %436 = vmatpush.xpose.msk.msra.mxu1 %vm56_vm0, %v42_v3 }
   0x8   :  { %7 = vsyncpa [#allocation3], 0  ;;  %v24_v6 = vld [vmem:[%s716_s0 + $0x60] sm:$0xff]  ;;  %v23_v8 = vld [vmem:[%s716_s0 + $0x58] sm:$0xff]  ;;  %v514_v21 = vmov 32   ;;  %vm239_vm1 = vcmask 64512  }
   0x9   :  { %v40_v7 = vld [vmem:[%s716_s0 + $0xe0] sm:$0xff]  ;;  %v39_v9 = vld [vmem:[%s716_s0 + $0xd8] sm:$0xff]  ;;  %v22_v10 = vld [vmem:[%s716_s0 + $0x50] sm:$0xff]  ;;  %465 = vset.pattern.permute.xlu0 %v514_v21  ;;  %467 = vset.pattern.permute.xlu2 %v514_v21  ;;  %vm354_vm2 = vcmask 261120   ;;  %s408_s5 = sshll.u32 %s718_s2, 4  ;;  %s409_s5 = int_to_ptr.hbm [resolvable:$true] %s408_s5 }
   0xa   :  { %419 = vmatpush.xpose.msk.msra.mxu0 %vm56_vm0, %v25_v4  ;;  %v38_v11 = vld [vmem:[%s716_s0 + $0xd0] sm:$0xff]  ;;  %v21_v12 = vld [vmem:[%s716_s0 + $0x48] sm:$0xff]  ;;  %v20_v14 = vld [vmem:[%s716_s0 + $0x40] sm:$0xff]  ;;  %466 = vset.pattern.permute.xlu1 %v514_v21 }
   0xb   :  { %437 = vmatpush.xpose.msk.msra.mxu1 %vm56_vm0, %v41_v5  ;;  %v37_v13 = vld [vmem:[%s716_s0 + $0xc8] sm:$0xff]  ;;  %v36_v15 = vld [vmem:[%s716_s0 + $0xc0] sm:$0xff]  ;;  %v19_v16 = vld [vmem:[%s716_s0 + $0x38] sm:$0xff] }
   0xc   :  { %v35_v17 = vld [vmem:[%s716_s0 + $0xb8] sm:$0xff]  ;;  %v45_v18 = vld [vmem:[%s717_s1 + $0x8] sm:$0xff]  ;;  %v18_v19 = vld [vmem:[%s716_s0 + $0x30] sm:$0xff] }
   0xd   :  { %v34_v20 = vld [vmem:[%s716_s0 + $0xb0] sm:$0xff]  ;;  %53 = vperm.xlu0 %465, %v45_v18   ;;  %v17_v22 = vld [vmem:[%s716_s0 + $0x28] sm:$0xff]  ;;  %v16_v26 = vld [vmem:[%s716_s0 + $0x20] sm:$0xff] }
   0xe   :  { %420 = vmatpush.xpose.msk.msra.mxu0 %vm56_vm0, %v24_v6  ;;  %v33_v23 = vld [vmem:[%s716_s0 + $0xa8] sm:$0xff]  ;;  %v628_v25 = vld [vmem:[%s717_s1 + $0x10] sm:$0xff]  ;;  %v32_v27 = vld [vmem:[%s716_s0 + $0xa0] sm:$0xff] }
   0xf   :  { %438 = vmatpush.xpose.msk.msra.mxu1 %vm56_vm0, %v40_v7  ;;  %v623_v24 = vld [vmem:[%s717_s1 + $0x28] sm:$0xff]  ;;  %221 = vperm.xlu2 %467, %v628_v25   ;;  %v15_v28 = vld [vmem:[%s716_s0 + $0x18] sm:$0xff]  ;;  %v651_v30 = vld [vmem:[%s717_s1 + $0x30] sm:$0xff] }
  0x10   :  { %v31_v29 = vld [vmem:[%s716_s0 + $0x98] sm:$0xff]  ;;  %v44_v31 = vld [vmem:[%s717_s1] sm:$0xff]  ;;  %v14_v32 = vld [vmem:[%s716_s0 + $0x10] sm:$0xff] }
  0x11   :  { %v30_v33 = vld [vmem:[%s716_s0 + $0x90] sm:$0xff]  ;;  %v13_v34 = vld [vmem:[%s716_s0 + $0x8] sm:$0xff]  ;;  %v12_v36 = vld [vmem:[%s716_s0] sm:$0xff] }
  0x12   :  { %421 = vmatpush.xpose.msk.msra.mxu0 %vm56_vm0, %v23_v8  ;;  %v29_v35 = vld [vmem:[%s716_s0 + $0x88] sm:$0xff]  ;;  %v28_v37 = vld [vmem:[%s716_s0 + $0x80] sm:$0xff]  ;;  %v216_v49 = vld [vmem:[%s717_s1 + $0x18] sm:$0xff] }
  0x13   :  { %439 = vmatpush.xpose.msk.msra.mxu1 %vm56_vm0, %v39_v9  ;;  %v217_v40 = vld [vmem:[%s717_s1 + $0x20] sm:$0xff]  ;;  %s515_s1 = smov [#allocation2]  }
  0x14   :  { %231 = vperm.xlu1 %466, %v217_v40   ;;  %s406_s30 = sshll.u32 %s515_s1, 4  ;;  %s407_s30 = int_to_ptr.vmem [resolvable:$true] %s406_s30 }
  0x15   :  { %236 = vperm.xlu0 %465, %v623_v24  }
  0x16   :  { %422 = vmatpush.xpose.msk.msra.mxu0 %vm56_vm0, %v22_v10 }
  0x17   :  { %440 = vmatpush.xpose.msk.msra.mxu1 %vm56_vm0, %v38_v11  ;;  %48 = vperm.xlu2 %467, %v44_v31  }
  0x1a   :  { %423 = vmatpush.xpose.msk.msra.mxu0 %vm56_vm0, %v21_v12 }
  0x1b   :  { %441 = vmatpush.xpose.msk.msra.mxu1 %vm56_vm0, %v37_v13 }
  0x1c   :  { %226 = vperm.xlu1 %466, %v216_v49  }
  0x1d   :  { %351 = vperm.xlu0 %465, %v651_v30  }
  0x1e   :  { %424 = vmatpush.xpose.msk.msra.mxu0 %vm56_vm0, %v20_v14 }
  0x1f   :  { %442 = vmatpush.xpose.msk.msra.mxu1 %vm56_vm0, %v36_v15 }
  0x22   :  { %425 = vmatpush.xpose.msk.msra.mxu0 %vm56_vm0, %v19_v16 }
  0x23   :  { %443 = vmatpush.xpose.msk.msra.mxu1 %vm56_vm0, %v35_v17 }
  0x26   :  { %426 = vmatpush.xpose.msk.msra.mxu0 %vm56_vm0, %v18_v19 }
  0x27   :  { %444 = vmatpush.xpose.msk.msra.mxu1 %vm56_vm0, %v34_v20 }
  0x2a   :  { %427 = vmatpush.xpose.msk.msra.mxu0 %vm56_vm0, %v17_v22 }
  0x2b   :  { %445 = vmatpush.xpose.msk.msra.mxu1 %vm56_vm0, %v33_v23 }
  0x2e   :  { %428 = vmatpush.xpose.msk.msra.mxu0 %vm56_vm0, %v16_v26 }
  0x2f   :  { %446 = vmatpush.xpose.msk.msra.mxu1 %vm56_vm0, %v32_v27 }
  0x32   :  { %429 = vmatpush.xpose.msk.msra.mxu0 %vm56_vm0, %v15_v28 }
  0x33   :  { %447 = vmatpush.xpose.msk.msra.mxu1 %vm56_vm0, %v31_v29 }
  0x36   :  { %430 = vmatpush.xpose.msk.msra.mxu0 %vm56_vm0, %v14_v32 }
  0x37   :  { %448 = vmatpush.xpose.msk.msra.mxu1 %vm56_vm0, %v30_v33 }
  0x3a   :  { %431 = vmatpush.xpose.msk.msra.mxu0 %vm56_vm0, %v13_v34 }
  0x3b   :  { %449 = vmatpush.xpose.msk.msra.mxu1 %vm56_vm0, %v29_v35 }
  0x3e   :  { %432 = vmatpush.xpose.msk.msra.mxu0 %vm56_vm0, %v12_v36 }
  0x3f   :  { %450 = vmatpush.xpose.msk.msra.mxu1 %vm56_vm0, %v28_v37 }
  0x41   :  { %433 = vmatmul.msk.f32.vlgmr.msra.gmra.mxu0 %vm56_vm0, %v44_v31 }
  0x42   :  { %451 = vmatmul.msk.f32.vlgmr.msra.gmra.mxu1 %vm56_vm0, %v44_v31 }
  0x49   :  { %434 = vmatmul.msk.f32.gmra.mxu0 %vm56_vm0, %v45_v18 }
  0x4a   :  { %452 = vmatmul.msk.f32.gmra.mxu1 %vm56_vm0, %v45_v18 }
  0x69   :  { %v222_v46 = vpop.permute.xlu2 %221 }
  0x71   :  { %v49_v53 = vpop.permute.xlu2 %48 }
  0x7f   :  { %v54_v41 = vpop.permute.xlu0 %53 }
  0x86   :  { %v232_v1 = vpop.permute.xlu1 %231 }
  0x87   :  { %v237_v18 = vpop.permute.xlu0 %236 }
  0x8e   :  { %v227_v6 = vpop.permute.xlu1 %226 }
  0xbe   :  { %v174_v38 = vpop.f32.mrf.mxu0 }
  0xbf   :  { %v197_v39 = vpop.f32.mrf.mxu1  ;;  %v175_v57 = vadd.f32 %v174_v38, %v49_v53 }
  0xc0   :  { %v198_v59 = vadd.f32 %v197_v39, %v49_v53 }
  0xc6   :  { %v177_v42 = vpop.f32.mrf.mxu0 }
  0xc7   :  { %v200_v43 = vpop.f32.mrf.mxu1  ;;  %v178_v44 = vadd.f32 %v177_v42, %v54_v41 }
  0xc8   :  { %v201_v45 = vadd.f32 %v200_v43, %v54_v41 }
  0xc9   :  { %v205_v47 = vmul.f32 0.5, %v178_v44 }
  0xca   :  { %v206_v48 = vmul.f32 0.5, %v201_v45 }
  0xcb   :  { %468 = vtanh.f32 %v205_v47 }
  0xcc   :  { %470 = vtanh.f32 %v206_v48 }
  0xd1   :  { %v469_v50 = vpop.eup %468 }
  0xd2   :  { %v471_v51 = vpop.eup %470  ;;  %v209_v52 = vmul.f32 0.5, %v469_v50 }
  0xd3   :  { %v210_v54 = vmul.f32 0.5, %v471_v51 }
  0xd4   :  { %v211_v55 = vadd.f32 0.5, %v209_v52 }
  0xd5   :  { %v212_v56 = vadd.f32 0.5, %v210_v54 }
  0xd6   :  { %v213_v58 = vmul.f32 %v211_v55, %v178_v44 }
  0xd7   :  { %v214_v60 = vmul.f32 %v212_v56, %v201_v45 }
  0xd8   :  { %263 = vmatpush.msra.mxu2 %v213_v58  ;;  %v693_v61 = vadd.f32 %v213_v58, %v175_v57 }
  0xd9   :  { %292 = vmatpush.msra.mxu3 %v214_v60  ;;  %v695_v62 = vadd.f32 %v214_v60, %v198_v59  ;;  %453 = vmatmul.msk.f32.vlgmr.msra.gmra.mxu2 %vm239_vm1, %v628_v25  ;;  %v352_v59 = vpop.permute.xlu0 %351 }
  0xda   :  { %457 = vmatmul.msk.f32.vlgmr.msra.gmra.mxu3 %vm239_vm1, %v628_v25 }
  0xe1   :  { %454 = vmatmul.msk.f32.gmra.mxu2 %vm239_vm1, %v216_v49 }
  0xe2   :  { %458 = vmatmul.msk.f32.gmra.mxu3 %vm239_vm1, %v216_v49 }
  0xe9   :  { %455 = vmatmul.msk.f32.gmra.mxu2 %vm239_vm1, %v217_v40 }
  0xea   :  { %459 = vmatmul.msk.f32.gmra.mxu3 %vm239_vm1, %v217_v40 }
  0xf1   :  { %456 = vmatmul.msk.f32.gmra.mxu2 %vm239_vm1, %v623_v24 }
  0xf2   :  { %460 = vmatmul.msk.f32.gmra.mxu3 %vm239_vm1, %v623_v24 }
 0x15c   :  { %v265_v63 = vpop.f32.mrf.mxu2 }
 0x15d   :  { %v294_v0 = vpop.f32.mrf.mxu3  ;;  %v701_v4 = vadd.f32 %v265_v63, %v222_v46 }
 0x15e   :  { %v703_v5 = vadd.f32 %v294_v0, %v222_v46 }
 0x15f   :  { %v308_v11 = vmul.f32 0.5, %v701_v4 }
 0x160   :  { %v309_v13 = vmul.f32 0.5, %v703_v5 }
 0x161   :  { %472 = vtanh.f32 %v308_v11 }
 0x162   :  { %474 = vtanh.f32 %v309_v13 }
 0x164   :  { %v268_v2 = vpop.f32.mrf.mxu2 }
 0x165   :  { %v297_v3 = vpop.f32.mrf.mxu3  ;;  %v269_v12 = vadd.f32 %v268_v2, %v227_v6 }
 0x166   :  { %v298_v14 = vadd.f32 %v297_v3, %v227_v6 }
 0x167   :  { %v310_v17 = vmul.f32 0.5, %v269_v12  ;;  %v473_v26 = vpop.eup %472 }
 0x168   :  { %v311_v19 = vmul.f32 0.5, %v298_v14  ;;  %v475_v27 = vpop.eup %474  ;;  %v324_v43 = vmul.f32 0.5, %v473_v26 }
 0x169   :  { %v325_v46 = vmul.f32 0.5, %v475_v27 }
 0x16a   :  { %v332_v52 = vadd.f32 0.5, %v324_v43 }
 0x16b   :  { %v333_v54 = vadd.f32 0.5, %v325_v46 }
 0x16c   :  { %v271_v7 = vpop.f32.mrf.mxu2  ;;  %v340_v57 = vmul.f32 %v332_v52, %v701_v4 }
 0x16d   :  { %v272_v8 = vadd.f32 %v271_v7, %v232_v1  ;;  %v300_v9 = vpop.f32.mrf.mxu3  ;;  %v341_v58 = vmul.f32 %v333_v54, %v703_v5 }
 0x16e   :  { %v301_v10 = vadd.f32 %v300_v9, %v232_v1 }
 0x16f   :  { %v312_v15 = vmul.f32 0.5, %v272_v8 }
 0x170   :  { %v313_v16 = vmul.f32 0.5, %v301_v10 }
 0x171   :  { %476 = vtanh.f32 %v312_v15 }
 0x172   :  { %478 = vtanh.f32 %v313_v16 }
 0x173   :  { %480 = vtanh.f32 %v310_v17 }
 0x174   :  { %v274_v20 = vpop.f32.mrf.mxu2  ;;  %482 = vtanh.f32 %v311_v19 }
 0x175   :  { %v275_v21 = vadd.f32 %v274_v20, %v237_v18  ;;  %v303_v22 = vpop.f32.mrf.mxu3 }
 0x176   :  { %v304_v23 = vadd.f32 %v303_v22, %v237_v18 }
 0x177   :  { %v314_v24 = vmul.f32 0.5, %v275_v21  ;;  %v477_v28 = vpop.eup %476 }
 0x178   :  { %v315_v25 = vmul.f32 0.5, %v304_v23  ;;  %v479_v29 = vpop.eup %478  ;;  %v328_v33 = vmul.f32 0.5, %v477_v28 }
 0x179   :  { %484 = vtanh.f32 %v314_v24  ;;  %v481_v31 = vpop.eup %480  ;;  %v329_v35 = vmul.f32 0.5, %v479_v29 }
 0x17a   :  { %486 = vtanh.f32 %v315_v25  ;;  %v483_v32 = vpop.eup %482  ;;  %v326_v38 = vmul.f32 0.5, %v481_v31  ;;  %v336_v42 = vadd.f32 0.5, %v328_v33 }
 0x17b   :  { %v327_v40 = vmul.f32 0.5, %v483_v32  ;;  %v337_v45 = vadd.f32 0.5, %v329_v35 }
 0x17c   :  { %v334_v48 = vadd.f32 0.5, %v326_v38  ;;  %v344_v51 = vmul.f32 %v336_v42, %v272_v8 }
 0x17d   :  { %v335_v50 = vadd.f32 0.5, %v327_v40  ;;  %v345_v53 = vmul.f32 %v337_v45, %v301_v10 }
 0x17e   :  { %v342_v55 = vmul.f32 %v334_v48, %v269_v12 }
 0x17f   :  { %v485_v34 = vpop.eup %484  ;;  %v343_v56 = vmul.f32 %v335_v50, %v298_v14 }
 0x180   :  { %v487_v36 = vpop.eup %486  ;;  %v330_v37 = vmul.f32 0.5, %v485_v34 }
 0x181   :  { %v331_v39 = vmul.f32 0.5, %v487_v36 }
 0x182   :  { %v338_v41 = vadd.f32 0.5, %v330_v37 }
 0x183   :  { %v339_v44 = vadd.f32 0.5, %v331_v39 }
 0x184   :  { %v346_v47 = vmul.f32 %v338_v41, %v275_v21 }
 0x185   :  { %v347_v49 = vmul.f32 %v339_v44, %v304_v23 }
 0x186   :  { %369 = vmatpush.msrb.mxu2 %v346_v47 }
 0x187   :  { %389 = vmatpush.msrb.mxu3 %v347_v49 }
 0x188   :  { %370 = vmatpush.msrb.mxu2 %v344_v51 }
 0x189   :  { %390 = vmatpush.msrb.mxu3 %v345_v53 }
 0x18a   :  { %371 = vmatpush.msrb.mxu2 %v342_v55 }
 0x18b   :  { %391 = vmatpush.msrb.mxu3 %v343_v56 }
 0x18c   :  { %372 = vmatpush.msrb.mxu2 %v340_v57 }
 0x18d   :  { %392 = vmatpush.msrb.mxu3 %v341_v58  ;;  %461 = vmatmul.msk.f32.vlgmr.msrb.gmra.mxu2 %vm354_vm2, %v651_v30 }
 0x18e   :  { %462 = vmatmul.msk.f32.vlgmr.msrb.gmra.mxu3 %vm354_vm2, %v651_v30 }
 0x210   :  { %v374_v60 = vpop.f32.mrf.mxu2 }
 0x211   :  { %v375_v63 = vadd.f32 %v374_v60, %v352_v59  ;;  %v394_v0 = vpop.f32.mrf.mxu3 }
 0x212   :  { %v395_v1 = vadd.f32 %v394_v0, %v352_v59 }
 0x213   :  { %v397_v2 = vadd.f32 %v375_v63, %v693_v61 }
 0x214   :  { %v398_v3 = vadd.f32 %v395_v1, %v695_v62 }
 0x215   :  { %399 = vst [vmem:[#allocation2] sm:$0xff] %v397_v2 }
 0x216   :  { %400 = vst [vmem:[#allocation2 + $0x8] sm:$0xff] %v398_v3 }
 0x217   :  { %411 = dma.vmem_to_hbm [thread:$0]  %s407_s30, 256, %s409_s5, [#allocation3]  }
 0x218   :  { %512 = dma.done.wait [#allocation3], 256  }
 0x219   :  { %513 = vsyncadd [#allocation3], 4294967040 }
 0x21a   :  { %416 = vsyncpa [#allocation3], 1 }

</bundles_post_ra>
